<compile_context>
chip_gen: v7x
topology: tpu7x:2x2x1
jax: 0.10.0
libtpu: 0.0.40
codegen_flags: <defaults>
</compile_context>

<pallas_src>
import functools
import math

import jax
import jax.numpy as jnp
from jax.experimental import pallas as pl
from jax.experimental.pallas import tpu as pltpu


# ----------------------------------------------------------------------------
# VMEM budgeting / tiling helpers
# ----------------------------------------------------------------------------
_VMEM_LIMIT = 32 * 1024 * 1024     # requested scoped VMEM (safe on v5e/v6e/v7x)
_VMEM_BUDGET = 24 * 1024 * 1024    # target working-set per kernel (headroom)


def _cparams(semantics):
    return pltpu.CompilerParams(dimension_semantics=semantics,
                                vmem_limit_bytes=_VMEM_LIMIT)


def _pick_tile(dim, target, quantum):
    """Largest tile <= target that divides dim (multiple of quantum), else dim."""
    if dim <= target:
        return dim
    t = max((target // quantum) * quantum, quantum)
    while t > quantum and dim % t:
        t -= quantum
    return t if dim % t == 0 else dim


def _dense_tiles(M, N, K, tm, tn, tk, residual=False, min_tn=128):
    """Pick (tm, tn, tk) dividing (M, N, K) whose double-buffered bf16 working
    set plus the f32 accumulator fits the VMEM budget.  Guards against
    _pick_tile's full-dimension fallback blowing VMEM on v7x."""
    min_tn = max(min_tn, 128)
    while True:
        TM = _pick_tile(M, tm, 8)
        TN = _pick_tile(N, tn, 128)
        TK = _pick_tile(K, tk, 128)
        ws = (2 * (TM * TK + TK * TN + TM * TN) * 2   # bf16 x / w / out, 2-buffered
              + 2 * TN * 4                            # f32 bias
              + TM * TN * 4)                          # f32 accumulator scratch
        if residual:
            ws += 2 * TM * TN * 2                     # bf16 residual, 2-buffered
        if ws <= _VMEM_BUDGET or (tm <= 8 and tn <= min_tn and tk <= 128):
            return TM, TN, TK
        if tm >= max(tn, tk) and tm > 8:
            tm = max(tm // 2, 8)
        elif tk >= tn and tk > 128:
            tk = max(tk // 2, 128)
        elif tn > min_tn:
            tn = max(tn // 2, min_tn)
        else:
            tm = max(tm // 2, 8)


def _gelu_tanh(y):
    # TODO(synk): HF BERT default GELU is the exact erf form; tanh approx used here.
    c = math.sqrt(2.0 / math.pi)
    return 0.5 * y * (1.0 + jnp.tanh(c * (y + 0.044715 * y * y * y)))


def _bf16(x):
    return x if x.dtype == jnp.bfloat16 else x.astype(jnp.bfloat16)


# ----------------------------------------------------------------------------
# Tiled dense (bias + optional activation fused in epilogue), bf16 in / bf16 out
# ----------------------------------------------------------------------------
def _dense_kernel(x_ref, w_ref, b_ref, o_ref, acc_ref, *, act):
    k = pl.program_id(2)

    @pl.when(k == 0)
    def _():
        acc_ref[...] = jnp.zeros_like(acc_ref)

    acc_ref[...] += jnp.dot(x_ref[...], w_ref[...],
                            preferred_element_type=jnp.float32)

    @pl.when(k == pl.num_programs(2) - 1)
    def _():
        y = acc_ref[...] + b_ref[...].astype(jnp.float32)
        if act == "gelu":
            y = _gelu_tanh(y)
        elif act == "relu":
            y = jnp.maximum(y, 0.0)
        o_ref[...] = y.astype(o_ref.dtype)


def dense(x, w, b, act="none", tm=1024, tn=512, tk=512):
    """x: (M, K) bf16; w: (K, N) bf16; b: (1, N) f32 -> (M, N) bf16."""
    x = _bf16(x)
    M, K = x.shape
    N = w.shape[1]
    tm, tn, tk = _dense_tiles(M, N, K, tm, tn, tk)
    return pl.pallas_call(
        functools.partial(_dense_kernel, act=act),
        out_shape=jax.ShapeDtypeStruct((M, N), jnp.bfloat16),
        grid_spec=pltpu.PrefetchScalarGridSpec(
            num_scalar_prefetch=0,
            grid=(M // tm, N // tn, K // tk),
            in_specs=[
                pl.BlockSpec((tm, tk), lambda i, j, k: (i, k)),
                pl.BlockSpec((tk, tn), lambda i, j, k: (k, j)),
                pl.BlockSpec((1, tn), lambda i, j, k: (0, j)),
            ],
            out_specs=pl.BlockSpec((tm, tn), lambda i, j, k: (i, j)),
            scratch_shapes=[pltpu.VMEM((tm, tn), jnp.float32)],
        ),
        compiler_params=_cparams(("parallel", "parallel", "arbitrary")),
    )(x, w, b)


# ----------------------------------------------------------------------------
# Tiled dense with fused residual add + LayerNorm epilogue (full N per tile,
# since the LN reduction runs over the whole hidden dim).  bf16 in / bf16 out,
# LN math in f32.
# ----------------------------------------------------------------------------
def _dense_res_ln_kernel(x_ref, w_ref, b_ref, r_ref, g_ref, bb_ref, o_ref,
                         acc_ref, *, eps):
    k = pl.program_id(1)

    @pl.when(k == 0)
    def _():
        acc_ref[...] = jnp.zeros_like(acc_ref)

    acc_ref[...] += jnp.dot(x_ref[...], w_ref[...],
                            preferred_element_type=jnp.float32)

    @pl.when(k == pl.num_programs(1) - 1)
    def _():
        y = (acc_ref[...] + b_ref[...].astype(jnp.float32)
             + r_ref[...].astype(jnp.float32))
        mu = jnp.mean(y, axis=-1, keepdims=True)
        var = jnp.mean(jnp.square(y - mu), axis=-1, keepdims=True)
        yn = (y - mu) * jax.lax.rsqrt(var + eps)
        o_ref[...] = (yn * g_ref[...] + bb_ref[...]).astype(o_ref.dtype)


def dense_res_ln(x, w, b, residual, gamma, beta, eps=1e-12, tm=1024, tk=512):
    """LayerNorm((x @ w + b) + residual) with gamma/beta, fully fused. bf16 out."""
    x = _bf16(x)
    residual = _bf16(residual)
    M, K = x.shape
    N = w.shape[1]
    tm, _, tk = _dense_tiles(M, N, K, tm, N, tk, residual=True, min_tn=N)
    return pl.pallas_call(
        functools.partial(_dense_res_ln_kernel, eps=eps),
        out_shape=jax.ShapeDtypeStruct((M, N), jnp.bfloat16),
        grid_spec=pltpu.PrefetchScalarGridSpec(
            num_scalar_prefetch=0,
            grid=(M // tm, K // tk),
            in_specs=[
                pl.BlockSpec((tm, tk), lambda i, k: (i, k)),
                pl.BlockSpec((tk, N), lambda i, k: (k, 0)),
                pl.BlockSpec((1, N), lambda i, k: (0, 0)),
                pl.BlockSpec((tm, N), lambda i, k: (i, 0)),
                pl.BlockSpec((1, N), lambda i, k: (0, 0)),
                pl.BlockSpec((1, N), lambda i, k: (0, 0)),
            ],
            out_specs=pl.BlockSpec((tm, N), lambda i, k: (i, 0)),
            scratch_shapes=[pltpu.VMEM((tm, N), jnp.float32)],
        ),
        compiler_params=_cparams(("parallel", "arbitrary")),
    )(x, w, b, residual, gamma, beta)


# ----------------------------------------------------------------------------
# Standalone LayerNorm (embedding LN only): f32 in, bf16 out.
# ----------------------------------------------------------------------------
def _layernorm_kernel(x_ref, g_ref, b_ref, o_ref, *, eps):
    x = x_ref[...].astype(jnp.float32)
    mu = jnp.mean(x, axis=-1, keepdims=True)
    var = jnp.mean(jnp.square(x - mu), axis=-1, keepdims=True)
    y = (x - mu) * jax.lax.rsqrt(var + eps)
    o_ref[...] = (y * g_ref[...] + b_ref[...]).astype(o_ref.dtype)


def layernorm(x, gamma, beta, eps=1e-12, tm=1024):
    M, H = x.shape
    tm = _pick_tile(M, tm, 8)
    return pl.pallas_call(
        functools.partial(_layernorm_kernel, eps=eps),
        out_shape=jax.ShapeDtypeStruct((M, H), jnp.bfloat16),
        grid_spec=pltpu.PrefetchScalarGridSpec(
            num_scalar_prefetch=0,
            grid=(M // tm,),
            in_specs=[
                pl.BlockSpec((tm, H), lambda i: (i, 0)),
                pl.BlockSpec((1, H), lambda i: (0, 0)),
                pl.BlockSpec((1, H), lambda i: (0, 0)),
            ],
            out_specs=pl.BlockSpec((tm, H), lambda i: (i, 0)),
        ),
        compiler_params=_cparams(("parallel",)),
    )(x, gamma, beta)


# ----------------------------------------------------------------------------
# Multi-head attention: one (batch, head) pair per grid step (both axes
# parallel -> B*nh steps for v7x megacore).  Only a single (S,S) score tile is
# live per step; softmax denominator uses the EUP reciprocal.
# TODO(synk): for very long S a flash-style kv-tiled formulation would avoid
# the (S,S) f32 intermediate entirely.
# ----------------------------------------------------------------------------
def _attention_kernel(q_ref, k_ref, v_ref, m_ref, o_ref, *, scale):
    q = q_ref[0, 0]                                  # (S, dh) bf16
    k = k_ref[0, 0]
    v = v_ref[0, 0]
    mask = m_ref[0].astype(jnp.float32)              # (1, S) additive mask
    s = jax.lax.dot_general(q, k, (((1,), (1,)), ((), ())),
                            preferred_element_type=jnp.float32) * scale + mask
    s = s - jnp.max(s, axis=-1, keepdims=True)
    p = jnp.exp(s)
    p = p * pl.reciprocal(jnp.sum(p, axis=-1, keepdims=True), approx=True)
    ctx = jnp.dot(p.astype(jnp.bfloat16), v, preferred_element_type=jnp.float32)
    o_ref[0, 0] = ctx.astype(o_ref.dtype)


def mha_attention(q, k, v, add_mask, scale):
    """q/k/v: (B, nh, S, dh) bf16; add_mask: (B, 1, S) f32 -> (B, nh, S, dh) bf16."""
    B, nh, S, dh = q.shape
    return pl.pallas_call(
        functools.partial(_attention_kernel, scale=scale),
        out_shape=jax.ShapeDtypeStruct((B, nh, S, dh), jnp.bfloat16),
        grid_spec=pltpu.PrefetchScalarGridSpec(
            num_scalar_prefetch=0,
            grid=(B, nh),
            in_specs=[
                pl.BlockSpec((1, 1, S, dh), lambda b, h: (b, h, 0, 0)),
                pl.BlockSpec((1, 1, S, dh), lambda b, h: (b, h, 0, 0)),
                pl.BlockSpec((1, 1, S, dh), lambda b, h: (b, h, 0, 0)),
                pl.BlockSpec((1, 1, S), lambda b, h: (b, 0, 0)),
            ],
            out_specs=pl.BlockSpec((1, 1, S, dh), lambda b, h: (b, h, 0, 0)),
        ),
        compiler_params=_cparams(("parallel", "parallel")),
    )(q, k, v, add_mask)


# ----------------------------------------------------------------------------
# Fused head-merge + Wo projection + residual + LayerNorm.  The K-reduction
# axis of the matmul runs over heads, so the per-head context never needs a
# JAX-side merge transpose / HBM relayout: out = LN(sum_h ctx_h @ Wo_h + b + r).
# ----------------------------------------------------------------------------
def _heads_proj_res_ln_kernel(ctx_ref, w_ref, b_ref, r_ref, g_ref, bb_ref,
                              o_ref, acc_ref, *, eps):
    h = pl.program_id(1)

    @pl.when(h == 0)
    def _():
        acc_ref[...] = jnp.zeros_like(acc_ref)

    acc_ref[...] += jnp.dot(ctx_ref[0, 0], w_ref[0],
                            preferred_element_type=jnp.float32)

    @pl.when(h == pl.num_programs(1) - 1)
    def _():
        y = (acc_ref[...] + b_ref[...].astype(jnp.float32)
             + r_ref[0].astype(jnp.float32))
        mu = jnp.mean(y, axis=-1, keepdims=True)
        var = jnp.mean(jnp.square(y - mu), axis=-1, keepdims=True)
        yn = (y - mu) * jax.lax.rsqrt(var + eps)
        o_ref[0] = (yn * g_ref[...] + bb_ref[...]).astype(o_ref.dtype)


def mha_out_proj_res_ln(ctx, wo_heads, bo, residual, gamma, beta, eps=1e-12):
    """ctx: (B, nh, S, dh) bf16; wo_heads: (nh, dh, H) bf16; residual: (B, S, H) bf16."""
    B, nh, S, dh = ctx.shape
    H = wo_heads.shape[2]
    return pl.pallas_call(
        functools.partial(_heads_proj_res_ln_kernel, eps=eps),
        out_shape=jax.ShapeDtypeStruct((B, S, H), jnp.bfloat16),
        grid_spec=pltpu.PrefetchScalarGridSpec(
            num_scalar_prefetch=0,
            grid=(B, nh),
            in_specs=[
                pl.BlockSpec((1, 1, S, dh), lambda b, h: (b, h, 0, 0)),
                pl.BlockSpec((1, dh, H), lambda b, h: (h, 0, 0)),
                pl.BlockSpec((1, H), lambda b, h: (0, 0)),
                pl.BlockSpec((1, S, H), lambda b, h: (b, 0, 0)),
                pl.BlockSpec((1, H), lambda b, h: (0, 0)),
                pl.BlockSpec((1, H), lambda b, h: (0, 0)),
            ],
            out_specs=pl.BlockSpec((1, S, H), lambda b, h: (b, 0, 0)),
            scratch_shapes=[pltpu.VMEM((S, H), jnp.float32)],
        ),
        compiler_params=_cparams(("parallel", "arbitrary")),
    )(ctx, wo_heads, bo, residual, gamma, beta)


# ----------------------------------------------------------------------------
# Fused GCN layer: heads axis is an in-kernel reduction (f32 VMEM accumulator);
# ReLU, head-mean and alpha/beta residual mix fused into the epilogue.
# adj_n / h / x are pre-cast bf16 in the wrapper (cast once, reused by every
# head and every layer).  Output is (B, S, H) bf16 directly.
# ----------------------------------------------------------------------------
def _gcn_kernel(adj_ref, h_ref, x_ref, w_ref, b_ref, o_ref, acc_ref,
                *, heads, alpha, beta):
    hi = pl.program_id(1)

    @pl.when(hi == 0)
    def _():
        acc_ref[...] = jnp.zeros_like(acc_ref)

    hw = jnp.dot(h_ref[0], w_ref[0], preferred_element_type=jnp.float32)
    agg = jnp.dot(adj_ref[0], hw.astype(jnp.bfloat16),
                  preferred_element_type=jnp.float32) + b_ref[0].astype(jnp.float32)
    acc_ref[...] += jnp.maximum(agg, 0.0)

    @pl.when(hi == heads - 1)
    def _():
        o_ref[0] = (alpha * x_ref[0].astype(jnp.float32)
                    + (beta / heads) * acc_ref[...]).astype(o_ref.dtype)


def gcn_layer(adj_n, h, x, w, b, alpha, beta):
    """adj_n: (B,S,S) bf16; h,x: (B,S,H) bf16; w: (heads,H,H) bf16; b: (heads,1,H) f32."""
    B, S, _ = adj_n.shape
    heads, H, _ = w.shape
    return pl.pallas_call(
        functools.partial(_gcn_kernel, heads=heads, alpha=alpha, beta=beta),
        out_shape=jax.ShapeDtypeStruct((B, S, H), jnp.bfloat16),
        grid_spec=pltpu.PrefetchScalarGridSpec(
            num_scalar_prefetch=0,
            grid=(B, heads),
            in_specs=[
                pl.BlockSpec((1, S, S), lambda bi, hi: (bi, 0, 0)),
                pl.BlockSpec((1, S, H), lambda bi, hi: (bi, 0, 0)),
                pl.BlockSpec((1, S, H), lambda bi, hi: (bi, 0, 0)),
                pl.BlockSpec((1, H, H), lambda bi, hi: (hi, 0, 0)),
                pl.BlockSpec((1, 1, H), lambda bi, hi: (hi, 0, 0)),
            ],
            out_specs=pl.BlockSpec((1, S, H), lambda bi, hi: (bi, 0, 0)),
            scratch_shapes=[pltpu.VMEM((S, H), jnp.float32)],
        ),
        compiler_params=_cparams(("parallel", "arbitrary")),
    )(adj_n, h, x, w, b)


# ----------------------------------------------------------------------------
# Classifier head: linear(2H->256) -> (dropout=identity) -> classifier -> log_softmax
# Tiny kernel; bf16 weights, f32 accumulation and log_softmax.
# ----------------------------------------------------------------------------
def _classifier_head_kernel(x_ref, w1_ref, b1_ref, w2_ref, b2_ref, o_ref):
    x = x_ref[...]                                               # (B, 2H) bf16
    h = jnp.dot(x, w1_ref[...], preferred_element_type=jnp.float32) + b1_ref[...]
    logits = jnp.dot(h.astype(jnp.bfloat16), w2_ref[...],
                     preferred_element_type=jnp.float32) + b2_ref[...]
    m = jnp.max(logits, axis=-1, keepdims=True)
    z = logits - m
    lse = jnp.log(jnp.sum(jnp.exp(z), axis=-1, keepdims=True))
    o_ref[...] = z - lse                                         # log_softmax


def classifier_head(x, w1, b1, w2, b2):
    B, F = x.shape
    Nh = w1.shape[1]
    L = w2.shape[1]
    return pl.pallas_call(
        _classifier_head_kernel,
        out_shape=jax.ShapeDtypeStruct((B, L), jnp.float32),
        grid_spec=pltpu.PrefetchScalarGridSpec(
            num_scalar_prefetch=0,
            grid=(1,),
            in_specs=[
                pl.BlockSpec((B, F), lambda i: (0, 0)),
                pl.BlockSpec((F, Nh), lambda i: (0, 0)),
                pl.BlockSpec((1, Nh), lambda i: (0, 0)),
                pl.BlockSpec((Nh, L), lambda i: (0, 0)),
                pl.BlockSpec((1, L), lambda i: (0, 0)),
            ],
            out_specs=pl.BlockSpec((B, L), lambda i: (0, 0)),
        ),
    )(x, w1, b1, w2, b2)


# ----------------------------------------------------------------------------
# Model pieces (plain-JAX glue around the Pallas kernels)
# ----------------------------------------------------------------------------
def bert_forward(params, input_ids, attention_mask, cfg):
    """Tiny synthetic BERT encoder; returns last_hidden_state (B, S, H) bf16."""
    B, S = input_ids.shape
    H = cfg["hidden"]
    nh = cfg["num_heads"]
    dh = H // nh

    # Embedding lookups (glue).
    emb = (jnp.take(params["word_emb"], input_ids, axis=0)
           + params["pos_emb"][None, :S, :]
           + params["type_emb"][0][None, None, :])
    h2 = layernorm(emb.reshape(B * S, H), params["emb_ln_g"], params["emb_ln_b"])

    add_mask = ((1.0 - attention_mask.astype(jnp.float32)) * -1e9)[:, None, :]  # (B,1,S)
    scale = 1.0 / math.sqrt(dh)

    for layer in params["layers"]:
        # Fused QKV projection: one HBM read of h2, one kernel launch.
        qkv = dense(h2, layer["wqkv"], layer["bqkv"])                 # (B*S, 3H) bf16
        qkv = qkv.reshape(B, S, 3, nh, dh)
        # TODO(synk): fold this bf16 head-split relayout into the QKV epilogue.
        q = jnp.transpose(qkv[:, :, 0], (0, 2, 1, 3))                 # (B, nh, S, dh)
        k = jnp.transpose(qkv[:, :, 1], (0, 2, 1, 3))
        v = jnp.transpose(qkv[:, :, 2], (0, 2, 1, 3))
        ctx = mha_attention(q, k, v, add_mask, scale)                 # (B, nh, S, dh)
        # Head merge + Wo projection + residual + LN fused (K axis = heads).
        h3 = mha_out_proj_res_ln(ctx, layer["wo"], layer["bo"],
                                 h2.reshape(B, S, H),
                                 layer["ln1_g"], layer["ln1_b"])      # (B, S, H) bf16
        h2 = h3.reshape(B * S, H)
        # FFN: up-projection with fused GELU, down-projection + residual + LN fused.
        ffn = dense(h2, layer["w1"], layer["b1"], act="gelu")
        h2 = dense_res_ln(ffn, layer["w2"], layer["b2"],
                          h2, layer["ln2_g"], layer["ln2_b"])
    return h2.reshape(B, S, H)


def abgcn_forward(x, adj, weights, biases, alpha, beta):
    """Multi-head GCN stack with alpha/beta residual mixing. Returns (B, S, H) bf16."""
    # TODO(synk): exact ABGCN internals live in the external metaphor_mwe repo; this is
    # a faithful multi-head GCN (per-head adj @ X @ W_h + ReLU, head-averaged,
    # alpha*input + beta*conv residual) with the declared heads/layers/alpha/beta.
    adj_n = (adj / jnp.clip(jnp.sum(adj, axis=-1, keepdims=True), 1.0, None)
             ).astype(jnp.bfloat16)          # cast once; reused by all layers/heads
    x = _bf16(x)
    h = x
    for layer in range(weights.shape[0]):
        h = gcn_layer(adj_n, h, x, weights[layer], biases[layer], alpha, beta)
    return h


def bert_with_gcn_and_mwe_forward(params, input_ids, target_token_idx,
                                  attention_mask, adj, adj_mwe, batch, cfg):
    last_hidden = bert_forward(params["bert"], input_ids, attention_mask, cfg)
    gcn1 = abgcn_forward(last_hidden, adj, params["gcn1_w"], params["gcn1_b"],
                         alpha=0.1, beta=0.8)
    gcn2 = abgcn_forward(last_hidden, adj_mwe, params["gcn2_w"], params["gcn2_b"],
                         alpha=0.3, beta=0.8)
    gcn = jnp.concatenate([gcn1, gcn2], axis=2)                            # (B, S, 2H)
    idx = target_token_idx.reshape(-1, 1, 1)
    idx = jnp.broadcast_to(idx, (batch, 1, gcn.shape[-1]))
    gcn_pooled = jnp.take_along_axis(gcn, idx, axis=1).reshape(batch, -1)  # (B, 2H)
    return classifier_head(_bf16(gcn_pooled),
                           params["linear_w"], params["linear_b"],
                           params["cls_w"], params["cls_b"])


# ----------------------------------------------------------------------------
# Deterministic synthetic parameter init (matmul weights stored in bf16)
# ----------------------------------------------------------------------------
def init_params(key, cfg):
    H = cfg["hidden"]; I = cfg["intermediate"]; V = cfg["vocab"]; S = cfg["max_len"]
    L = cfg["num_layers"]; nh = cfg["num_heads"]
    heads = cfg["gcn_heads"]; heads_mwe = cfg["gcn_heads_mwe"]
    gl = cfg["gcn_layers"]; num_labels = cfg["num_labels"]
    dh = H // nh
    keys = iter(jax.random.split(key, 128))

    def nrm(shape, scale=0.02, dtype=jnp.float32):
        return (scale * jax.random.normal(next(keys), shape)).astype(dtype)

    bert = {
        "word_emb": nrm((V, H)),
        "pos_emb": nrm((S, H)),
        "type_emb": nrm((2, H)),
        "emb_ln_g": jnp.ones((1, H), jnp.float32),
        "emb_ln_b": jnp.zeros((1, H), jnp.float32),
        "layers": [],
    }
    for _ in range(L):
        bert["layers"].append({
            "wqkv": nrm((H, 3 * H), dtype=jnp.bfloat16),
            "bqkv": jnp.zeros((1, 3 * H), jnp.float32),
            # Wo stored head-major (nh, dh, H) so the head-merge matmul can use
            # the heads axis as its K-reduction (no JAX-side merge transpose).
            "wo": nrm((H, H), dtype=jnp.bfloat16).reshape(nh, dh, H),
            "bo": jnp.zeros((1, H), jnp.float32),
            "ln1_g": jnp.ones((1, H), jnp.float32),
            "ln1_b": jnp.zeros((1, H), jnp.float32),
            "w1": nrm((H, I), dtype=jnp.bfloat16),
            "b1": jnp.zeros((1, I), jnp.float32),
            "w2": nrm((I, H), dtype=jnp.bfloat16),
            "b2": jnp.zeros((1, H), jnp.float32),
            "ln2_g": jnp.ones((1, H), jnp.float32),
            "ln2_b": jnp.zeros((1, H), jnp.float32),
        })
    return {
        "bert": bert,
        "gcn1_w": nrm((gl, heads, H, H), 0.1, dtype=jnp.bfloat16),
        "gcn1_b": jnp.zeros((gl, heads, 1, H), jnp.float32),
        "gcn2_w": nrm((gl, heads_mwe, H, H), 0.1, dtype=jnp.bfloat16),
        "gcn2_b": jnp.zeros((gl, heads_mwe, 1, H), jnp.float32),
        "linear_w": nrm((2 * H, 256), dtype=jnp.bfloat16),
        "linear_b": jnp.zeros((1, 256), jnp.float32),
        "cls_w": nrm((256, num_labels), dtype=jnp.bfloat16),
        "cls_b": jnp.zeros((1, num_labels), jnp.float32),
    }


# ----------------------------------------------------------------------------
if __name__ == "__main__":
    cfg = dict(vocab=100, hidden=32, intermediate=64, num_layers=2, num_heads=4,
               max_len=16, gcn_heads=2, gcn_heads_mwe=2, gcn_layers=2, num_labels=2)
    B, S = 2, cfg["max_len"]

    key = jax.random.PRNGKey(0)
    pkey, ikey, akey, a2key, tkey = jax.random.split(key, 5)
    params = init_params(pkey, cfg)

    input_ids = jax.random.randint(ikey, (B, S), 0, cfg["vocab"], dtype=jnp.int32)
    attention_mask = jnp.ones((B, S), jnp.float32).at[1, -2:].set(0.0)
    adj = (jax.random.uniform(akey, (B, S, S)) < 0.3).astype(jnp.float32)
    adj = jnp.maximum(adj, jnp.eye(S, dtype=jnp.float32)[None])
    adj_mwe = (jax.random.uniform(a2key, (B, S, S)) < 0.3).astype(jnp.float32)
    adj_mwe = jnp.maximum(adj_mwe, jnp.eye(S, dtype=jnp.float32)[None])
    target_token_idx = jax.random.randint(tkey, (B,), 0, S, dtype=jnp.int32)

    log_probs = bert_with_gcn_and_mwe_forward(
        params, input_ids, target_token_idx, attention_mask, adj, adj_mwe, B, cfg)
    log_probs = jax.block_until_ready(log_probs)

    assert log_probs.shape == (B, cfg["num_labels"])
    assert bool(jnp.all(jnp.isfinite(log_probs)))
    print("KERNEL_OK")
</pallas_src>

<mosaic_0001>
module attributes {stable_mosaic.version = 11 : i64} {
  func.func @_layernorm_kernel(%arg0: i32, %arg1: memref<32x32xf32, #tpu.memory_space<vmem>>, %arg2: memref<1x32xf32, #tpu.memory_space<vmem>>, %arg3: memref<1x32xf32, #tpu.memory_space<vmem>>, %arg4: memref<32x32xbf16, #tpu.memory_space<vmem>>) attributes {dimension_semantics = [#tpu.dimension_semantics<parallel>], iteration_bounds = array<i64: 1>, scalar_prefetch = 0 : i64, scratch_operands = 0 : i64, tpu.core_type = #tpu.core_type<tc>, window_params = [{transform_indices = @transform_0, window_bounds = array<i64: 32, 32>}, {pipeline_mode = #tpu.pipeline_mode<synchronous>, transform_indices = @transform_1, window_bounds = array<i64: 1, 32>}, {pipeline_mode = #tpu.pipeline_mode<synchronous>, transform_indices = @transform_2, window_bounds = array<i64: 1, 32>}, {transform_indices = @transform_3, window_bounds = array<i64: 32, 32>}]} {
    %c0 = arith.constant 0 : index
    %c0_0 = arith.constant 0 : index
    %0 = vector.load %arg1[%c0, %c0_0] : memref<32x32xf32, #tpu.memory_space<vmem>>, vector<32x32xf32>
    %cst = arith.constant dense<0.000000e+00> : vector<32xf32>
    %1 = vector.multi_reduction <add>, %0, %cst [1] : vector<32x32xf32> to vector<32xf32>
    %2 = vector.shape_cast %1 : vector<32xf32> to vector<32x1xf32>
    %cst_1 = arith.constant 3.200000e+01 : f32
    %3 = vector.broadcast %cst_1 : f32 to vector<32x1xf32>
    %4 = arith.divf %2, %3 : vector<32x1xf32>
    %5 = vector.broadcast %4 : vector<32x1xf32> to vector<32x32xf32>
    %6 = arith.subf %0, %5 : vector<32x32xf32>
    %7 = arith.mulf %6, %6 : vector<32x32xf32>
    %cst_2 = arith.constant dense<0.000000e+00> : vector<32xf32>
    %8 = vector.multi_reduction <add>, %7, %cst_2 [1] : vector<32x32xf32> to vector<32xf32>
    %9 = vector.shape_cast %8 : vector<32xf32> to vector<32x1xf32>
    %cst_3 = arith.constant 3.200000e+01 : f32
    %10 = vector.broadcast %cst_3 : f32 to vector<32x1xf32>
    %11 = arith.divf %9, %10 : vector<32x1xf32>
    %12 = vector.broadcast %4 : vector<32x1xf32> to vector<32x32xf32>
    %13 = arith.subf %0, %12 : vector<32x32xf32>
    %cst_4 = arith.constant 9.99999996E-13 : f32
    %14 = vector.broadcast %cst_4 : f32 to vector<32x1xf32>
    %15 = arith.addf %11, %14 : vector<32x1xf32>
    %16 = math.rsqrt %15 : vector<32x1xf32>
    %17 = vector.broadcast %16 : vector<32x1xf32> to vector<32x32xf32>
    %18 = arith.mulf %13, %17 : vector<32x32xf32>
    %c0_5 = arith.constant 0 : index
    %c0_6 = arith.constant 0 : index
    %19 = vector.load %arg2[%c0_5, %c0_6] : memref<1x32xf32, #tpu.memory_space<vmem>>, vector<1x32xf32>
    %20 = vector.broadcast %19 : vector<1x32xf32> to vector<32x32xf32>
    %21 = arith.mulf %18, %20 : vector<32x32xf32>
    %c0_7 = arith.constant 0 : index
    %c0_8 = arith.constant 0 : index
    %22 = vector.load %arg3[%c0_7, %c0_8] : memref<1x32xf32, #tpu.memory_space<vmem>>, vector<1x32xf32>
    %23 = vector.broadcast %22 : vector<1x32xf32> to vector<32x32xf32>
    %24 = arith.addf %21, %23 : vector<32x32xf32>
    %25 = arith.truncf %24 : vector<32x32xf32> to vector<32x32xbf16>
    %c0_9 = arith.constant 0 : index
    %c0_10 = arith.constant 0 : index
    %26 = vector.load %arg4[%c0_9, %c0_10] : memref<32x32xbf16, #tpu.memory_space<vmem>>, vector<32x32xbf16>
    tpu.vector_store %arg4[%c0_9, %c0_10], %25 {strides = array<i32>} : memref<32x32xbf16, #tpu.memory_space<vmem>>, vector<32x32xbf16>,
    return
  }
  func.func @transform_0(%arg0: i32) -> (i32, i32) {
    %c0_i32 = arith.constant 0 : i32
    %c0_i32_0 = arith.constant 0 : i32
    return %arg0, %c0_i32 : i32, i32
  }
  func.func @transform_1(%arg0: i32) -> (i32, i32) {
    %c0_i32 = arith.constant 0 : i32
    %c0_i32_0 = arith.constant 0 : i32
    %c0_i32_1 = arith.constant 0 : i32
    return %c0_i32, %c0_i32_0 : i32, i32
  }
  func.func @transform_2(%arg0: i32) -> (i32, i32) {
    %c0_i32 = arith.constant 0 : i32
    %c0_i32_0 = arith.constant 0 : i32
    %c0_i32_1 = arith.constant 0 : i32
    return %c0_i32, %c0_i32_0 : i32, i32
  }
  func.func @transform_3(%arg0: i32) -> (i32, i32) {
    %c0_i32 = arith.constant 0 : i32
    %c0_i32_0 = arith.constant 0 : i32
    return %arg0, %c0_i32 : i32, i32
  }
}

</mosaic_0001>

<bundles_post_ra>
// kernel: tpu_custom_call.1
= control target key start
LH: loop header
LB: loop body
LE: loop exit
PB: predicated region body
PF: predicated region fallthrough
CT: control target
= control target key end

     0   :  { %8 = vsyncpa [#allocation3], 0  ;;  %s287_s0 = inlined_call_operand.hbm [shape: f32[32,32], index: 0, kind: input, shape index: {}]   ;;  %s288_s1 = inlined_call_operand.vmem [shape: f32[1,32], index: 1, kind: input, shape index: {}]   ;;  %s289_s2 = inlined_call_operand.vmem [shape: f32[1,32], index: 2, kind: input, shape index: {}]   ;;  %s290_s3 = inlined_call_operand.hbm [shape: bf16[32,32], index: 3, kind: output, shape index: {}]  }
   0x1   :  { %9 = vsyncpa [#allocation4], 0  ;;  %s219_s12 = smov [#allocation2]   ;;  %s171_s16 = scalar_lea.hbm %s287_s0, 512 }
   0x2   :  { %s15_s13 = sshll.u32 %s219_s12, 4  ;;  %p172_p0 = scmp.ne.s32.totalorder %s287_s0, %s171_s16  ;;  %s16_s13 = int_to_ptr.vmem [resolvable:$true] %s15_s13 }
   0x3   :  { %p175_p1 = scmp.lt.u32.totalorder %s171_s16, %s287_s0 }
   0x5   :  { %p177_p2 = pnand %p175_p1, %p172_p0 }
   0x7   :  { %180 = shalt.err (!%p177_p2)
}
   0x8   :  { %s181_s21 = scalar_lea.vmem %s16_s13, 512  ;;  %p186_p4 = scmp.lt.s32.totalorder %s16_s13, %s16_s13 }
   0x9   :  { %p182_p3 = scmp.ne.s32.totalorder %s16_s13, %s181_s21  ;;  %p187_p5 = scmp.lt.s32.totalorder %s181_s21, %s181_s21 }
   0xb   :  { %p188_p6 = por %p187_p5, %p186_p4 }
   0xd   :  { %p189_p7 = pnand %p188_p6, %p182_p3 }
   0xf   :  { %192 = shalt.err (!%p189_p7)
}
  0x10   :  { %s220_s22 = smov 128   ;;  %s221_s23 = smov 8  }
  0x11   :  { %21 = dma.hbm_to_vmem [thread:$0]  %s287_s0, 512, %s16_s13, [#allocation3], %s220_s22, %s220_s22, %s221_s23  }
  0x12   :  { %215 = dma.done.wait [#allocation3], 512  }
  0x13   :  { %216 = vsyncadd [#allocation3], 4294966784  ;;  %vm33_vm0 = vcmask 261120   ;;  %v29_v0 = vld [vmem:[#allocation2] sm:$0xff]  ;;  %v31_v1 = vld [vmem:[#allocation2 + $0x10] sm:$0xff]  ;;  %vm125_vm1 = vcmask 257024  }
  0x14   :  { %v30_v2 = vld [vmem:[#allocation2 + $0x8] sm:$0xff]  ;;  %v34_v3 = vsel %vm33_vm0, %v29_v0, 0.0  ;;  %v40_v4 = vsel %vm33_vm0, %v31_v1, 0.0  ;;  %v32_v5 = vld [vmem:[#allocation2 + $0x18] sm:$0xff]  ;;  %v147_v41 = vld [vmem:[%s288_s1] ss:$0 sm:$0xff] }
  0x15   :  { %35 = vadd.xlane.f32.xlu0 %v34_v3  ;;  %41 = vadd.xlane.f32.xlu1 %v40_v4  ;;  %v37_v6 = vsel %vm33_vm0, %v30_v2, 0.0  ;;  %v43_v7 = vsel %vm33_vm0, %v32_v5, 0.0  ;;  %v148_v43 = vld [vmem:[%s289_s2] ss:$0 sm:$0xff]  ;;  %s222_s1 = smov [#allocation5]  }
  0x16   :  { %s135_s2 = sshll.u32 %s222_s1, 4  ;;  %s136_s2 = int_to_ptr.vmem [resolvable:$true] %s135_s2 }
  0x17   :  { %s193_s29 = scalar_lea.vmem %s136_s2, 256  ;;  %p198_p9 = scmp.lt.s32.totalorder %s136_s2, %s136_s2 }
  0x18   :  { %p194_p8 = scmp.ne.s32.totalorder %s136_s2, %s193_s29  ;;  %p199_p10 = scmp.lt.s32.totalorder %s193_s29, %s193_s29 }
  0x19   :  { %38 = vadd.xlane.f32.xlu0 %v37_v6  ;;  %44 = vadd.xlane.f32.xlu1 %v43_v7 }
  0x1a   :  { %p200_p11 = por %p199_p10, %p198_p9 }
  0x1c   :  { %p201_p12 = pnand %p200_p11, %p194_p8 }
  0xa2   :  { %v36_v8 = vpop.xlane.xlu0 %35  ;;  %v42_v9 = vpop.xlane.xlu1 %41 }
  0xa3   :  { %v47_v10 = vmul.f32 0.03125, %v36_v8  ;;  %v49_v11 = vmul.f32 0.03125, %v42_v9 }
  0xa5   :  { %v51_v12 = vsub.f32 %v29_v0, %v47_v10  ;;  %v53_v13 = vsub.f32 %v31_v1, %v49_v11 }
  0xa6   :  { %v39_v14 = vpop.xlane.xlu0 %38  ;;  %v45_v15 = vpop.xlane.xlu1 %44 }
  0xa7   :  { %v48_v16 = vmul.f32 0.03125, %v39_v14  ;;  %v50_v17 = vmul.f32 0.03125, %v45_v15  ;;  %v55_v18 = vmul.f32 %v51_v12, %v51_v12  ;;  %v57_v19 = vmul.f32 %v53_v13, %v53_v13 }
  0xa9   :  { %v52_v20 = vsub.f32 %v30_v2, %v48_v16  ;;  %v54_v21 = vsub.f32 %v32_v5, %v50_v17  ;;  %v59_v22 = vsel %vm33_vm0, %v55_v18, 0.0  ;;  %v65_v23 = vsel %vm33_vm0, %v57_v19, 0.0 }
  0xaa   :  { %60 = vadd.xlane.f32.xlu0 %v59_v22 }
  0xab   :  { %v56_v24 = vmul.f32 %v52_v20, %v52_v20  ;;  %v58_v25 = vmul.f32 %v54_v21, %v54_v21 }
  0xad   :  { %v62_v26 = vsel %vm33_vm0, %v56_v24, 0.0  ;;  %v68_v27 = vsel %vm33_vm0, %v58_v25, 0.0 }
  0xae   :  { %66 = vadd.xlane.f32.xlu0 %v65_v23  ;;  %63 = vadd.xlane.f32.xlu1 %v62_v26 }
  0xb2   :  { %69 = vadd.xlane.f32.xlu1 %v68_v27 }
 0x137   :  { %v61_v28 = vpop.xlane.xlu0 %60 }
 0x138   :  { %v71_v29 = vmul.f32 0.03125, %v61_v28 }
 0x13a   :  { %v75_v30 = vadd.f32 1e-12, %v71_v29 }
 0x13b   :  { %v64_v31 = vpop.xlane.xlu1 %63  ;;  %v67_v32 = vpop.xlane.xlu0 %66 }
 0x13c   :  { %163 = vrsqrt.f32 %v75_v30  ;;  %v72_v33 = vmul.f32 0.03125, %v64_v31  ;;  %v73_v34 = vmul.f32 0.03125, %v67_v32 }
 0x13e   :  { %v76_v35 = vadd.f32 1e-12, %v72_v33  ;;  %v77_v36 = vadd.f32 1e-12, %v73_v34 }
 0x13f   :  { %v70_v37 = vpop.xlane.xlu1 %69 }
 0x140   :  { %165 = vrsqrt.f32 %v76_v35  ;;  %v74_v38 = vmul.f32 0.03125, %v70_v37 }
 0x141   :  { %167 = vrsqrt.f32 %v77_v36 }
 0x142   :  { %v78_v39 = vadd.f32 1e-12, %v74_v38 }
 0x144   :  { %169 = vrsqrt.f32 %v78_v39 }
 0x146   :  { %v164_v40 = vpop.eup %163 }
 0x147   :  { %v83_v42 = vmul.f32 %v164_v40, %v51_v12 }
 0x149   :  { %v94_v44 = vmul.f32 %v147_v41, %v83_v42 }
 0x14a   :  { %v166_v45 = vpop.eup %165 }
 0x14b   :  { %v168_v46 = vpop.eup %167  ;;  %v105_v47 = vadd.f32 %v148_v43, %v94_v44  ;;  %v84_v48 = vmul.f32 %v166_v45, %v52_v20 }
 0x14c   :  { %v85_v49 = vmul.f32 %v168_v46, %v53_v13 }
 0x14d   :  { %v153_v50 = vpack.c.bf16 %v105_v47, %v105_v47  ;;  %v95_v51 = vmul.f32 %v147_v41, %v84_v48 }
 0x14e   :  { %v170_v52 = vpop.eup %169  ;;  %v96_v53 = vmul.f32 %v147_v41, %v85_v49 }
 0x14f   :  { %v106_v54 = vadd.f32 %v148_v43, %v95_v51  ;;  %v86_v55 = vmul.f32 %v170_v52, %v54_v21  ;;  %126 = vst.msk [vmem:[#allocation5] sm:$0xf] %vm125_vm1, %v153_v50 }
 0x150   :  { %v107_v56 = vadd.f32 %v148_v43, %v96_v53 }
 0x151   :  { %v154_v57 = vpack.c.bf16 %v106_v54, %v106_v54  ;;  %v97_v58 = vmul.f32 %v147_v41, %v86_v55 }
 0x152   :  { %v155_v59 = vpack.c.bf16 %v107_v56, %v107_v56 }
 0x153   :  { %v108_v60 = vadd.f32 %v148_v43, %v97_v58  ;;  %127 = vst.msk [vmem:[#allocation5 + $0x4] sm:$0xf] %vm125_vm1, %v154_v57 }
 0x154   :  { %128 = vst.msk [vmem:[#allocation5 + $0x8] sm:$0xf] %vm125_vm1, %v155_v59 }
 0x155   :  { %v156_v61 = vpack.c.bf16 %v108_v60, %v108_v60 }
 0x157   :  { %129 = vst.msk [vmem:[#allocation5 + $0xc] sm:$0xf] %vm125_vm1, %v156_v61 }
 0x158   :  { %204 = shalt.err (!%p201_p12)
}
 0x159   :  { %s205_s5 = scalar_lea.hbm %s290_s3, 256 }
 0x15a   :  { %p206_p13 = scmp.ne.s32.totalorder %s290_s3, %s205_s5  ;;  %p209_p0 = scmp.lt.u32.totalorder %s205_s5, %s290_s3 }
 0x15c   :  { %p211_p1 = pnand %p209_p0, %p206_p13 }
 0x15e   :  { %214 = shalt.err (!%p211_p1)
}
 0x15f   :  { %s223_s10 = smov 64   ;;  %s224_s11 = smov 4  }
 0x160   :  { %141 = dma.vmem_to_hbm [thread:$0]  %s136_s2, 256, %s290_s3, [#allocation4], %s223_s10, %s223_s10, %s224_s11  }
 0x161   :  { %217 = dma.done.wait [#allocation4], 256  }
 0x162   :  { %218 = vsyncadd [#allocation4], 4294967040 }
 0x163   :  { %145 = vsyncpa [#allocation3], 1 }
 0x164   :  { %146 = vsyncpa [#allocation4], 1 }

</bundles_post_ra>
